<compile_context>
chip_gen: v7x
topology: tpu7x:2x2x1
jax: 0.10.0
libtpu: 0.0.40
codegen_flags: <defaults>
</compile_context>

<pallas_src>
import numpy as np
import jax
import jax.numpy as jnp
from jax.experimental import pallas as pl
from jax.experimental.pallas import tpu as pltpu

# ----------------------------- small synthetic config -----------------------
M_ITEMS = 64        # spots   -> node ids [0, M_ITEMS)
N_USERS = 40        # users   -> node ids [M_ITEMS, M_ITEMS+N_USERS)
N_CATEGORY = 16     # cats    -> next N_CATEGORY ids
N_CITY = 8          # cities  -> last N_CITY ids
N_NODES = M_ITEMS + N_USERS + N_CATEGORY + N_CITY   # 128
HIDDEN = 32         # hidden_channels
NUM_LAYERS = 3      # num_layers


# ----------------------------- Pallas kernel --------------------------------
def lightgcn_forward_kernel(p_ref, xt_ref, ot_ref):
    """out^T = x0^T @ P   (P = (I + A + ... + A^L)/(L+1), A_hat symmetric).

    xt_ref: (HIDDEN, N_NODES) bf16  -- lane-dense (full 128 lanes)
    p_ref : (N_NODES, N_NODES) bf16
    ot_ref: (HIDDEN, N_NODES) f32   -- unmasked stores, f32 accumulation
    """
    ot_ref[...] = jnp.dot(xt_ref[...], p_ref[...],
                          preferred_element_type=jnp.float32)


def lightgcn_forward(propagator, x0):
    """Returns x_out of shape (N_NODES, HIDDEN) == P @ x0 (== averaged layers)."""
    n, d = x0.shape
    # Wrapper-side layout plumbing (not compute): transpose + bf16 cast.
    xt = x0.T.astype(jnp.bfloat16)               # (HIDDEN, N_NODES)
    p_bf16 = propagator.astype(jnp.bfloat16)     # halves the largest DMA

    cost = pl.CostEstimate(
        flops=2 * d * n * n,                     # single (d,n)x(n,n) matmul
        transcendentals=0,
        bytes_accessed=n * n * 2 + d * n * 2 + d * n * 4,
    )

    out_t = pl.pallas_call(
        lightgcn_forward_kernel,
        out_shape=jax.ShapeDtypeStruct((d, n), jnp.float32),
        grid=(1,),
        in_specs=[
            pl.BlockSpec((n, n), lambda i: (0, 0)),   # P, full block in VMEM
            pl.BlockSpec((d, n), lambda i: (0, 0)),   # X0^T
        ],
        out_specs=pl.BlockSpec((d, n), lambda i: (0, 0)),
        compiler_params=pltpu.CompilerParams(
            dimension_semantics=("arbitrary",)),
        cost_estimate=cost,
    )(p_bf16, xt)

    # Back to node-major (N_NODES, HIDDEN) to keep the module's output layout.
    return out_t.T


# ----------------------------- graph / param setup (glue) -------------------
def build_normalized_adjacency():
    """Deterministic synthetic graph matching the module's node layout:
    user<->spot, spot<->category, spot<->city edges, both directions."""
    A = np.zeros((N_NODES, N_NODES), dtype=np.float32)

    # user-spot edges: each user connects to 5 spots (deterministic pattern)
    for u in range(N_USERS):
        user_node = M_ITEMS + u
        for j in range(5):
            spot_node = (u * 7 + j * 13) % M_ITEMS
            A[user_node, spot_node] = 1.0
            A[spot_node, user_node] = 1.0

    # spot-category and spot-city edges
    for s in range(M_ITEMS):
        cat_node = M_ITEMS + N_USERS + (s % N_CATEGORY)
        city_node = M_ITEMS + N_USERS + N_CATEGORY + (s % N_CITY)
        A[s, cat_node] = 1.0
        A[cat_node, s] = 1.0
        A[s, city_node] = 1.0
        A[city_node, s] = 1.0

    deg = A.sum(axis=1)
    inv_sqrt = np.where(deg > 0, 1.0 / np.sqrt(np.maximum(deg, 1e-12)), 0.0)
    A_hat = inv_sqrt[:, None] * A * inv_sqrt[None, :]
    return A_hat.astype(np.float32)


def build_propagator(a_hat_np, num_layers):
    """P = (I + A + A^2 + ... + A^L) / (L+1), precomputed once (A is fixed)."""
    n = a_hat_np.shape[0]
    p = np.eye(n, dtype=np.float32)
    a_pow = np.eye(n, dtype=np.float32)
    for _ in range(num_layers):
        a_pow = a_pow @ a_hat_np
        p = p + a_pow
    p = p / float(1 + num_layers)
    return jnp.asarray(p, dtype=jnp.float32)


def reference_forward(a_hat, x0):
    """Layered LightGCN forward in f32 (original module semantics)."""
    x = x0
    acc = x0
    for _ in range(NUM_LAYERS):
        x = a_hat @ x
        acc = acc + x
    return acc / (1 + NUM_LAYERS)


if __name__ == "__main__":
    key = jax.random.PRNGKey(0)
    # all_embedding.weight ~ Normal(0, 0.1), shape (N_NODES, HIDDEN)
    x0 = (0.1 * jax.random.normal(key, (N_NODES, HIDDEN))).astype(jnp.float32)

    a_hat_np = build_normalized_adjacency()
    a_hat = jnp.asarray(a_hat_np)
    propagator = build_propagator(a_hat_np, NUM_LAYERS)

    out = lightgcn_forward(propagator, x0)
    out = jax.block_until_ready(out)

    ref = reference_forward(a_hat, x0)
    assert out.shape == (N_NODES, HIDDEN)
    # bf16 kernel inputs + f32 accumulation -> compare within bf16 precision.
    assert jnp.allclose(out, ref, atol=1e-2, rtol=1e-2)

    # TODO(synk): bpr_loss / getRating heads (index gathers, softplus, user x
    # spot rating matmul) are left in plain JAX; only forward() is kernelized.
    print("KERNEL_OK")
</pallas_src>

<mosaic_0001>
module attributes {stable_mosaic.version = 11 : i64} {
  func.func @lightgcn_forward_kernel(%arg0: i32, %arg1: memref<128x128xbf16, #tpu.memory_space<vmem>>, %arg2: memref<32x128xbf16, #tpu.memory_space<vmem>>, %arg3: memref<32x128xf32, #tpu.memory_space<vmem>>) attributes {dimension_semantics = [#tpu.dimension_semantics<arbitrary>], iteration_bounds = array<i64: 1>, scalar_prefetch = 0 : i64, scratch_operands = 0 : i64, tpu.core_type = #tpu.core_type<tc>, window_params = [{pipeline_mode = #tpu.pipeline_mode<synchronous>, transform_indices = @transform_0, window_bounds = array<i64: 128, 128>}, {pipeline_mode = #tpu.pipeline_mode<synchronous>, transform_indices = @transform_1, window_bounds = array<i64: 32, 128>}, {pipeline_mode = #tpu.pipeline_mode<synchronous>, transform_indices = @transform_2, window_bounds = array<i64: 32, 128>}]} {
    %c0 = arith.constant 0 : index
    %c0_0 = arith.constant 0 : index
    %0 = vector.load %arg2[%c0, %c0_0] : memref<32x128xbf16, #tpu.memory_space<vmem>>, vector<32x128xbf16>
    %c0_1 = arith.constant 0 : index
    %c0_2 = arith.constant 0 : index
    %1 = vector.load %arg1[%c0_1, %c0_2] : memref<128x128xbf16, #tpu.memory_space<vmem>>, vector<128x128xbf16>
    %cst = arith.constant dense<0.000000e+00> : vector<32x128xf32>
    %2 = tpu.matmul %0, %1, %cst {dimension_numbers = #tpu.dot_dimension_numbers<[1], [0], [0], [1], [0, 0, 1, 1], [], []>} : vector<32x128xbf16>, vector<128x128xbf16>, vector<32x128xf32> -> vector<32x128xf32>
    %c0_3 = arith.constant 0 : index
    %c0_4 = arith.constant 0 : index
    %3 = vector.load %arg3[%c0_3, %c0_4] : memref<32x128xf32, #tpu.memory_space<vmem>>, vector<32x128xf32>
    tpu.vector_store %arg3[%c0_3, %c0_4], %2 {strides = array<i32>} : memref<32x128xf32, #tpu.memory_space<vmem>>, vector<32x128xf32>,
    return
  }
  func.func @transform_0(%arg0: i32) -> (i32, i32) {
    %c0_i32 = arith.constant 0 : i32
    %c0_i32_0 = arith.constant 0 : i32
    %c0_i32_1 = arith.constant 0 : i32
    return %c0_i32, %c0_i32_0 : i32, i32
  }
  func.func @transform_1(%arg0: i32) -> (i32, i32) {
    %c0_i32 = arith.constant 0 : i32
    %c0_i32_0 = arith.constant 0 : i32
    %c0_i32_1 = arith.constant 0 : i32
    return %c0_i32, %c0_i32_0 : i32, i32
  }
  func.func @transform_2(%arg0: i32) -> (i32, i32) {
    %c0_i32 = arith.constant 0 : i32
    %c0_i32_0 = arith.constant 0 : i32
    %c0_i32_1 = arith.constant 0 : i32
    return %c0_i32, %c0_i32_0 : i32, i32
  }
}

</mosaic_0001>

<bundles_post_ra>
// kernel: tpu_custom_call.1
= control target key start
LH: loop header
LB: loop body
LE: loop exit
PB: predicated region body
PF: predicated region fallthrough
CT: control target
= control target key end

     0   :  { %7 = vsyncpa [#allocation3], 0  ;;  %s379_s0 = inlined_call_operand.hbm [shape: bf16[128,128], index: 0, kind: input, shape index: {}]   ;;  %s380_s1 = inlined_call_operand.hbm [shape: bf16[32,128], index: 1, kind: input, shape index: {}]   ;;  %s381_s2 = inlined_call_operand.hbm [shape: f32[32,128], index: 2, kind: output, shape index: {}]  }
   0x1   :  { %8 = vsyncpa [#allocation6], 0 }
   0x2   :  { %9 = vsyncpa [#allocation4], 0  ;;  %s321_s9 = smov [#allocation2]   ;;  %s249_s13 = scalar_lea.hbm %s379_s0, 1024 }
   0x3   :  { %s15_s10 = sshll.u32 %s321_s9, 4  ;;  %p250_p0 = scmp.ne.s32.totalorder %s379_s0, %s249_s13  ;;  %s16_s10 = int_to_ptr.vmem [resolvable:$true] %s15_s10 }
   0x4   :  { %p253_p1 = scmp.lt.u32.totalorder %s249_s13, %s379_s0 }
   0x6   :  { %p255_p2 = pnand %p253_p1, %p250_p0 }
   0x8   :  { %258 = shalt.err (!%p255_p2)
}
   0x9   :  { %s259_s18 = scalar_lea.vmem %s16_s10, 1024  ;;  %p264_p4 = scmp.lt.s32.totalorder %s16_s10, %s16_s10 }
   0xa   :  { %p260_p3 = scmp.ne.s32.totalorder %s16_s10, %s259_s18  ;;  %p265_p5 = scmp.lt.s32.totalorder %s259_s18, %s259_s18 }
   0xc   :  { %p266_p6 = por %p265_p5, %p264_p4 }
   0xe   :  { %p267_p7 = pnand %p266_p6, %p260_p3 }
  0x10   :  { %270 = shalt.err (!%p267_p7)
}
  0x11   :  { %s322_s19 = smov 64   ;;  %s323_s20 = smov 4  }
  0x12   :  { %21 = dma.hbm_to_vmem [thread:$0]  %s379_s0, 1024, %s16_s10, [#allocation3], %s322_s19, %s322_s19, %s323_s20  }
  0x13   :  { %s324_s23 = smov [#allocation5]   ;;  %s271_s27 = scalar_lea.hbm %s380_s1, 256 }
  0x14   :  { %s27_s24 = sshll.u32 %s324_s23, 4  ;;  %p272_p8 = scmp.ne.s32.totalorder %s380_s1, %s271_s27  ;;  %s28_s24 = int_to_ptr.vmem [resolvable:$true] %s27_s24 }
  0x15   :  { %p275_p9 = scmp.lt.u32.totalorder %s271_s27, %s380_s1 }
  0x17   :  { %p277_p10 = pnand %p275_p9, %p272_p8 }
  0x19   :  { %280 = shalt.err (!%p277_p10)
}
  0x1a   :  { %s281_s4 = scalar_lea.vmem %s28_s24, 256  ;;  %p286_p12 = scmp.lt.s32.totalorder %s28_s24, %s28_s24 }
  0x1b   :  { %p282_p11 = scmp.ne.s32.totalorder %s28_s24, %s281_s4  ;;  %p287_p13 = scmp.lt.s32.totalorder %s281_s4, %s281_s4 }
  0x1d   :  { %p288_p0 = por %p287_p13, %p286_p12 }
  0x1f   :  { %p289_p1 = pnand %p288_p0, %p282_p11 }
  0x21   :  { %292 = shalt.err (!%p289_p1)
}
  0x22   :  { %33 = dma.hbm_to_vmem [thread:$0]  %s380_s1, 256, %s28_s24, [#allocation6], %s322_s19, %s322_s19, %s323_s20  }
  0x23   :  { %315 = dma.done.wait [#allocation3], 1024  }
  0x24   :  { %316 = vsyncadd [#allocation3], 4294966272 }
  0x25   :  { %317 = dma.done.wait [#allocation6], 256  }
  0x26   :  { %318 = vsyncadd [#allocation6], 4294967040  ;;  %v239_v0 = vld [vmem:[#allocation2] sm:$0xff]   ;;  %v240_v1 = vld [vmem:[#allocation2 + $0x8] sm:$0xff]   ;;  %s325_s1 = smov [#allocation7]  }
  0x27   :  { %212 = vmatprep.subr.bf16.mxu0 %v239_v0  ;;  %v241_v2 = vld [vmem:[#allocation2 + $0x10] sm:$0xff]   ;;  %v242_v3 = vld [vmem:[#allocation2 + $0x18] sm:$0xff]   ;;  %v247_v4 = vld [vmem:[#allocation5] sm:$0xff]   ;;  %s179_s6 = sshll.u32 %s325_s1, 4  ;;  %s180_s6 = int_to_ptr.vmem [resolvable:$true] %s179_s6 }
  0x28   :  { %213 = vmatpush3.bf16.msra.mxu0 %v239_v0  ;;  %228 = vmatprep.mubr.bf16.mxu0 %v247_v4  ;;  %v243_v5 = vld [vmem:[#allocation2 + $0x20] sm:$0xff]   ;;  %v244_v6 = vld [vmem:[#allocation2 + $0x28] sm:$0xff]   ;;  %v245_v7 = vld [vmem:[#allocation2 + $0x30] sm:$0xff]   ;;  %s293_s7 = scalar_lea.vmem %s180_s6, 512  ;;  %p298_p3 = scmp.lt.s32.totalorder %s180_s6, %s180_s6 }
  0x29   :  { %214 = vmatprep.subr.bf16.mxu0 %v240_v1  ;;  %v246_v8 = vld [vmem:[#allocation2 + $0x38] sm:$0xff]   ;;  %v248_v9 = vld [vmem:[#allocation5 + $0x8] sm:$0xff]   ;;  %p294_p2 = scmp.ne.s32.totalorder %s180_s6, %s293_s7  ;;  %p299_p4 = scmp.lt.s32.totalorder %s293_s7, %s293_s7 }
  0x2b   :  { %p300_p5 = por %p299_p4, %p298_p3 }
  0x2c   :  { %215 = vmatpush3.bf16.msra.mxu0 %v240_v1 }
  0x2d   :  { %216 = vmatprep.subr.bf16.mxu0 %v241_v2  ;;  %p301_p6 = pnand %p300_p5, %p294_p2 }
  0x30   :  { %217 = vmatpush3.bf16.msra.mxu0 %v241_v2 }
  0x31   :  { %218 = vmatprep.subr.bf16.mxu0 %v242_v3 }
  0x34   :  { %219 = vmatpush3.bf16.msra.mxu0 %v242_v3 }
  0x35   :  { %220 = vmatprep.subr.bf16.mxu0 %v243_v5 }
  0x38   :  { %221 = vmatpush3.bf16.msra.mxu0 %v243_v5 }
  0x39   :  { %222 = vmatprep.subr.bf16.mxu0 %v244_v6 }
  0x3c   :  { %223 = vmatpush3.bf16.msra.mxu0 %v244_v6 }
  0x3d   :  { %224 = vmatprep.subr.bf16.mxu0 %v245_v7 }
  0x40   :  { %225 = vmatpush3.bf16.msra.mxu0 %v245_v7 }
  0x41   :  { %226 = vmatprep.subr.bf16.mxu0 %v246_v8 }
  0x44   :  { %227 = vmatpush3.bf16.msra.mxu0 %v246_v8 }
  0x47   :  { %229 = vmatmul.mubr.bf16.vlgmr.msra.gmra.mrb[0].mxu0 %v248_v9 }
 0x11a   :  { %v230_v10 = vpop.f32.mrb[0].mxu0 }
 0x11b   :  { %172 = vst [vmem:[#allocation7 + $0x10] sm:$0xff] %v230_v10  ;;  %v155_v11 = vpop.f32.mrb[1].mxu0 }
 0x11c   :  { %170 = vst [vmem:[#allocation7] sm:$0xff] %v155_v11  ;;  %v231_v12 = vpop.f32.mrb[2].mxu0 }
 0x11d   :  { %173 = vst [vmem:[#allocation7 + $0x18] sm:$0xff] %v231_v12  ;;  %v158_v13 = vpop.f32.mrb[3].mxu0 }
 0x11e   :  { %171 = vst [vmem:[#allocation7 + $0x8] sm:$0xff] %v158_v13 }
 0x11f   :  { %304 = shalt.err (!%p301_p6)
}
 0x120   :  { %s305_s10 = scalar_lea.hbm %s381_s2, 512 }
 0x121   :  { %p306_p7 = scmp.ne.s32.totalorder %s381_s2, %s305_s10  ;;  %p309_p8 = scmp.lt.u32.totalorder %s305_s10, %s381_s2 }
 0x123   :  { %p311_p9 = pnand %p309_p8, %p306_p7 }
 0x125   :  { %314 = shalt.err (!%p311_p9)
}
 0x126   :  { %s326_s15 = smov 128   ;;  %s327_s16 = smov 8  }
 0x127   :  { %185 = dma.vmem_to_hbm [thread:$0]  %s180_s6, 512, %s381_s2, [#allocation4], %s326_s15, %s326_s15, %s327_s16  }
 0x128   :  { %319 = dma.done.wait [#allocation4], 512  }
 0x129   :  { %320 = vsyncadd [#allocation4], 4294966784 }
 0x12a   :  { %189 = vsyncpa [#allocation3], 1 }
 0x12b   :  { %190 = vsyncpa [#allocation6], 1 }
 0x12c   :  { %191 = vsyncpa [#allocation4], 1 }

</bundles_post_ra>
